<compile_context>
chip_gen: v7x
topology: tpu7x:2x2x1
jax: 0.10.0
libtpu: 0.0.40
codegen_flags: <defaults>
</compile_context>

<pallas_src>
import functools
import math

import jax
import jax.numpy as jnp
from jax.experimental import pallas as pl
from jax.experimental.pallas import tpu as pltpu

DIM = 32
HEADS = 4
HEAD_DIM = DIM // HEADS
MLP_RATIO = 2
HID = DIM * MLP_RATIO
EPS = 1e-5

PARAM_ORDER = ("ln1_w", "ln1_b", "wqkv_t", "bqkv", "wo_t", "bo",
               "ln2_w", "ln2_b", "w1_t", "b1", "w2_t", "b2")
MATMUL_WEIGHTS = ("wqkv_t", "wo_t", "w1_t", "w2_t")   # cast to bf16 for the MXU


def _layernorm(x, w, b):
    mu = jnp.mean(x, axis=-1, keepdims=True)
    var = jnp.mean(jnp.square(x - mu), axis=-1, keepdims=True)
    return (x - mu) * jax.lax.rsqrt(var + EPS) * w + b


def transformer_block_kernel(x_ref, ln1w_ref, ln1b_ref, wqkv_ref, bqkv_ref,
                             wo_ref, bo_ref, ln2w_ref, ln2b_ref,
                             w1_ref, b1_ref, w2_ref, b2_ref, o_ref,
                             *, tile_b, seq):
    tok = tile_b * seq
    x = x_ref[...].reshape(tok, DIM)                        # (TOK, D) f32

    # ---------------- attention branch ----------------
    xn = _layernorm(x, ln1w_ref[...], ln1b_ref[...])
    # Softmax scale already folded into the q-columns of wqkv_t / bqkv host-side.
    qkv = jnp.dot(xn.astype(jnp.bfloat16), wqkv_ref[...],
                  preferred_element_type=jnp.float32) + bqkv_ref[...]   # (TOK, 3D)

    def split_heads(z):
        # (TOK, D) -> (tile_b*HEADS, S, HEAD_DIM). Constant O(HEADS) relayout:
        # 4 lane slices + one major-axis concat (no batch-dependent unrolling).
        z4 = z.reshape(tile_b, 1, seq, DIM)
        heads = [z4[..., h * HEAD_DIM:(h + 1) * HEAD_DIM] for h in range(HEADS)]
        return (jnp.concatenate(heads, axis=1)
                .reshape(tile_b * HEADS, seq, HEAD_DIM)
                .astype(jnp.bfloat16))

    qh = split_heads(qkv[:, 0 * DIM:1 * DIM])               # (B*H, S, Hd) bf16
    kh = split_heads(qkv[:, 1 * DIM:2 * DIM])
    vh = split_heads(qkv[:, 2 * DIM:3 * DIM])

    s = jnp.einsum('bqd,bkd->bqk', qh, kh,
                   preferred_element_type=jnp.float32)      # (B*H, S, S) f32
    s = s - jnp.max(s, axis=-1, keepdims=True)
    p = jnp.exp(s)
    p = p * pl.reciprocal(jnp.sum(p, axis=-1, keepdims=True), approx=True)
    oh = jnp.einsum('bqk,bkd->bqd', p.astype(jnp.bfloat16), vh,
                    preferred_element_type=jnp.float32)     # (B*H, S, Hd) f32

    # merge heads back to token-major (TOK, D): constant O(HEADS) relayout
    oh4 = oh.reshape(tile_b, HEADS, seq, HEAD_DIM)
    attn = jnp.concatenate([oh4[:, h] for h in range(HEADS)], axis=-1)  # (TB,S,D)
    attn = attn.reshape(tok, DIM)

    attn = jnp.dot(attn.astype(jnp.bfloat16), wo_ref[...],
                   preferred_element_type=jnp.float32) + bo_ref[...]
    x = x + attn                     # residual (drop_path = identity in eval)

    # ---------------- MLP branch ----------------
    xn2 = _layernorm(x, ln2w_ref[...], ln2b_ref[...])
    h1 = jnp.dot(xn2.astype(jnp.bfloat16), w1_ref[...],
                 preferred_element_type=jnp.float32) + b1_ref[...]
    h1 = jnp.maximum(h1, 0.0)                                # ReLU
    h2 = jnp.dot(h1.astype(jnp.bfloat16), w2_ref[...],
                 preferred_element_type=jnp.float32) + b2_ref[...]
    o_ref[...] = (x + h2).reshape(tile_b, seq, DIM)          # residual


def _choose_tile_b(batch, seq):
    # Whole sequences per block; aim for a few hundred tokens per grid step so
    # the ~0.35 us/step overhead is amortized while live VMEM stays small.
    target = max(1, 512 // max(seq, 1))
    tb = min(batch, target)
    while batch % tb:
        tb -= 1
    return max(tb, 1)


def transformer_block(x, params, *, tile_b=None):
    B, S, D = x.shape
    assert D == DIM
    if tile_b is None:
        tile_b = _choose_tile_b(B, S)
    assert B % tile_b == 0, "tile_b must divide batch (whole sequences per block)"
    grid = (B // tile_b,)

    # Host-side param prep: fold softmax scale into the q-columns of the QKV
    # projection; cast matmul weights to bf16 (f32 accumulation in-kernel).
    scale = 1.0 / math.sqrt(HEAD_DIM)
    col_scale = jnp.concatenate(
        [jnp.full((DIM,), scale, jnp.float32), jnp.ones((2 * DIM,), jnp.float32)])
    prepped = dict(params)
    prepped["wqkv_t"] = params["wqkv_t"] * col_scale[None, :]
    prepped["bqkv"] = params["bqkv"] * col_scale[None, :]

    kernel_params = []
    for name in PARAM_ORDER:
        p = prepped[name]
        if name in MATMUL_WEIGHTS:
            p = p.astype(jnp.bfloat16)
        kernel_params.append(p)

    x_spec = pl.BlockSpec((tile_b, S, DIM), lambda i: (i, 0, 0))
    w_specs = [pl.BlockSpec(p.shape, lambda i: (0, 0)) for p in kernel_params]
    out_spec = pl.BlockSpec((tile_b, S, DIM), lambda i: (i, 0, 0))

    # advisory cost estimate for the XLA scheduler (whole call)
    T = B * S
    matmul_flops = 2 * T * D * (3 * D) + 2 * T * D * D + 4 * T * D * HID
    attn_flops = 2 * (2 * B * HEADS * S * S * HEAD_DIM)
    transcendentals = B * HEADS * S * S + B * HEADS * S + 2 * T
    bytes_accessed = (2 * T * D * 4
                      + sum(int(p.size) * p.dtype.itemsize for p in kernel_params))
    cost = pl.CostEstimate(flops=matmul_flops + attn_flops,
                           transcendentals=transcendentals,
                           bytes_accessed=bytes_accessed)

    kernel = functools.partial(transformer_block_kernel, tile_b=tile_b, seq=S)

    return pl.pallas_call(
        kernel,
        out_shape=jax.ShapeDtypeStruct((B, S, DIM), x.dtype),
        grid_spec=pltpu.PrefetchScalarGridSpec(
            num_scalar_prefetch=0,
            grid=grid,
            in_specs=[x_spec] + w_specs,
            out_specs=out_spec,
        ),
        compiler_params=pltpu.CompilerParams(
            dimension_semantics=("parallel",),      # batch chunks are independent
            vmem_limit_bytes=32 * 1024 * 1024,      # raise v5e's 16 MiB scoped default
        ),
        cost_estimate=cost,
    )(x, *kernel_params)


def init_params(key):
    ks = jax.random.split(key, 8)

    def rnd(k, shape, scale=0.05):
        return scale * jax.random.normal(k, shape, jnp.float32)

    return {
        # LayerNorm defaults: weight=1, bias=0
        "ln1_w": jnp.ones((1, DIM), jnp.float32),
        "ln1_b": jnp.zeros((1, DIM), jnp.float32),
        # MultiheadAttention: in_proj_weight (3D, D) stored transposed -> (D, 3D)
        "wqkv_t": rnd(ks[0], (DIM, 3 * DIM)),
        "bqkv":   rnd(ks[1], (1, 3 * DIM)),
        # out_proj weight (D, D) stored transposed
        "wo_t": rnd(ks[2], (DIM, DIM)),
        "bo":   rnd(ks[3], (1, DIM)),
        "ln2_w": jnp.ones((1, DIM), jnp.float32),
        "ln2_b": jnp.zeros((1, DIM), jnp.float32),
        # MLP: Linear(D, 2D), Linear(2D, D), weights stored transposed
        "w1_t": rnd(ks[4], (DIM, HID)),
        "b1":   rnd(ks[5], (1, HID)),
        "w2_t": rnd(ks[6], (HID, DIM)),
        "b2":   rnd(ks[7], (1, DIM)),
    }


def reference(x, p):
    """Pure-JAX f32 reference of the eval-mode PyTorch forward."""
    def ln(z, w, b):
        mu = z.mean(-1, keepdims=True)
        var = ((z - mu) ** 2).mean(-1, keepdims=True)
        return (z - mu) / jnp.sqrt(var + EPS) * w + b

    B, S, D = x.shape
    xn = ln(x, p["ln1_w"][0], p["ln1_b"][0])
    qkv = xn @ p["wqkv_t"] + p["bqkv"][0]
    q, k, v = jnp.split(qkv, 3, axis=-1)
    q = q.reshape(B, S, HEADS, HEAD_DIM).transpose(0, 2, 1, 3)
    k = k.reshape(B, S, HEADS, HEAD_DIM).transpose(0, 2, 1, 3)
    v = v.reshape(B, S, HEADS, HEAD_DIM).transpose(0, 2, 1, 3)
    s = (q @ k.transpose(0, 1, 3, 2)) / math.sqrt(HEAD_DIM)
    a = jax.nn.softmax(s, axis=-1)
    o = (a @ v).transpose(0, 2, 1, 3).reshape(B, S, D)
    o = o @ p["wo_t"] + p["bo"][0]
    x = x + o
    xn2 = ln(x, p["ln2_w"][0], p["ln2_b"][0])
    h = jnp.maximum(xn2 @ p["w1_t"] + p["b1"][0], 0.0)
    h = h @ p["w2_t"] + p["b2"][0]
    return x + h


if __name__ == "__main__":
    key = jax.random.PRNGKey(0)
    kx, kp = jax.random.split(key)
    B, S = 2, 8
    x = jax.random.normal(kx, (B, S, DIM), jnp.float32)
    params = init_params(kp)

    # tile_b=1 -> grid=(2,): exercises the multi-step pipelined / "parallel"
    # grid path at this tiny test size (the heuristic would pick tile_b=2).
    out = transformer_block(x, params, tile_b=1)
    out = jax.block_until_ready(out)

    ref = reference(x, params)
    assert out.shape == (B, S, DIM)
    # bf16 matmuls (f32 accumulation) + approx reciprocal vs pure-f32 reference.
    assert jnp.allclose(out, ref, atol=3e-2, rtol=3e-2), "mismatch vs pure-JAX reference"
    print("KERNEL_OK")
</pallas_src>

<mosaic_0001>
module attributes {stable_mosaic.version = 11 : i64} {
  func.func @transformer_block_kernel(%arg0: i32, %arg1: memref<1x8x32xf32, #tpu.memory_space<vmem>>, %arg2: memref<1x32xf32, #tpu.memory_space<vmem>>, %arg3: memref<1x32xf32, #tpu.memory_space<vmem>>, %arg4: memref<32x96xbf16, #tpu.memory_space<vmem>>, %arg5: memref<1x96xf32, #tpu.memory_space<vmem>>, %arg6: memref<32x32xbf16, #tpu.memory_space<vmem>>, %arg7: memref<1x32xf32, #tpu.memory_space<vmem>>, %arg8: memref<1x32xf32, #tpu.memory_space<vmem>>, %arg9: memref<1x32xf32, #tpu.memory_space<vmem>>, %arg10: memref<32x64xbf16, #tpu.memory_space<vmem>>, %arg11: memref<1x64xf32, #tpu.memory_space<vmem>>, %arg12: memref<64x32xbf16, #tpu.memory_space<vmem>>, %arg13: memref<1x32xf32, #tpu.memory_space<vmem>>, %arg14: memref<1x8x32xf32, #tpu.memory_space<vmem>>) attributes {dimension_semantics = [#tpu.dimension_semantics<parallel>], iteration_bounds = array<i64: 2>, scalar_prefetch = 0 : i64, scratch_operands = 0 : i64, tpu.core_type = #tpu.core_type<tc>, window_params = [{transform_indices = @transform_0, window_bounds = array<i64: 1, 8, 32>}, {pipeline_mode = #tpu.pipeline_mode<synchronous>, transform_indices = @transform_1, window_bounds = array<i64: 1, 32>}, {pipeline_mode = #tpu.pipeline_mode<synchronous>, transform_indices = @transform_2, window_bounds = array<i64: 1, 32>}, {pipeline_mode = #tpu.pipeline_mode<synchronous>, transform_indices = @transform_3, window_bounds = array<i64: 32, 96>}, {pipeline_mode = #tpu.pipeline_mode<synchronous>, transform_indices = @transform_4, window_bounds = array<i64: 1, 96>}, {pipeline_mode = #tpu.pipeline_mode<synchronous>, transform_indices = @transform_5, window_bounds = array<i64: 32, 32>}, {pipeline_mode = #tpu.pipeline_mode<synchronous>, transform_indices = @transform_6, window_bounds = array<i64: 1, 32>}, {pipeline_mode = #tpu.pipeline_mode<synchronous>, transform_indices = @transform_7, window_bounds = array<i64: 1, 32>}, {pipeline_mode = #tpu.pipeline_mode<synchronous>, transform_indices = @transform_8, window_bounds = array<i64: 1, 32>}, {pipeline_mode = #tpu.pipeline_mode<synchronous>, transform_indices = @transform_9, window_bounds = array<i64: 32, 64>}, {pipeline_mode = #tpu.pipeline_mode<synchronous>, transform_indices = @transform_10, window_bounds = array<i64: 1, 64>}, {pipeline_mode = #tpu.pipeline_mode<synchronous>, transform_indices = @transform_11, window_bounds = array<i64: 64, 32>}, {pipeline_mode = #tpu.pipeline_mode<synchronous>, transform_indices = @transform_12, window_bounds = array<i64: 1, 32>}, {transform_indices = @transform_13, window_bounds = array<i64: 1, 8, 32>}]} {
    %c0 = arith.constant 0 : index
    %c0_0 = arith.constant 0 : index
    %c0_1 = arith.constant 0 : index
    %0 = vector.load %arg1[%c0, %c0_0, %c0_1] : memref<1x8x32xf32, #tpu.memory_space<vmem>>, vector<1x8x32xf32>
    %1 = vector.shape_cast %0 : vector<1x8x32xf32> to vector<8x32xf32>
    %c0_2 = arith.constant 0 : index
    %c0_3 = arith.constant 0 : index
    %2 = vector.load %arg2[%c0_2, %c0_3] : memref<1x32xf32, #tpu.memory_space<vmem>>, vector<1x32xf32>
    %c0_4 = arith.constant 0 : index
    %c0_5 = arith.constant 0 : index
    %3 = vector.load %arg3[%c0_4, %c0_5] : memref<1x32xf32, #tpu.memory_space<vmem>>, vector<1x32xf32>
    %cst = arith.constant dense<0.000000e+00> : vector<8xf32>
    %4 = vector.multi_reduction <add>, %1, %cst [1] : vector<8x32xf32> to vector<8xf32>
    %5 = vector.shape_cast %4 : vector<8xf32> to vector<8x1xf32>
    %cst_6 = arith.constant 3.200000e+01 : f32
    %6 = vector.broadcast %cst_6 : f32 to vector<8x1xf32>
    %7 = arith.divf %5, %6 : vector<8x1xf32>
    %8 = vector.broadcast %7 : vector<8x1xf32> to vector<8x32xf32>
    %9 = arith.subf %1, %8 : vector<8x32xf32>
    %10 = arith.mulf %9, %9 : vector<8x32xf32>
    %cst_7 = arith.constant dense<0.000000e+00> : vector<8xf32>
    %11 = vector.multi_reduction <add>, %10, %cst_7 [1] : vector<8x32xf32> to vector<8xf32>
    %12 = vector.shape_cast %11 : vector<8xf32> to vector<8x1xf32>
    %cst_8 = arith.constant 3.200000e+01 : f32
    %13 = vector.broadcast %cst_8 : f32 to vector<8x1xf32>
    %14 = arith.divf %12, %13 : vector<8x1xf32>
    %15 = vector.broadcast %7 : vector<8x1xf32> to vector<8x32xf32>
    %16 = arith.subf %1, %15 : vector<8x32xf32>
    %cst_9 = arith.constant 9.99999974E-6 : f32
    %17 = vector.broadcast %cst_9 : f32 to vector<8x1xf32>
    %18 = arith.addf %14, %17 : vector<8x1xf32>
    %19 = math.rsqrt %18 : vector<8x1xf32>
    %20 = vector.broadcast %19 : vector<8x1xf32> to vector<8x32xf32>
    %21 = arith.mulf %16, %20 : vector<8x32xf32>
    %22 = vector.broadcast %2 : vector<1x32xf32> to vector<8x32xf32>
    %23 = arith.mulf %21, %22 : vector<8x32xf32>
    %24 = vector.broadcast %3 : vector<1x32xf32> to vector<8x32xf32>
    %25 = arith.addf %23, %24 : vector<8x32xf32>
    %26 = arith.truncf %25 : vector<8x32xf32> to vector<8x32xbf16>
    %c0_10 = arith.constant 0 : index
    %c0_11 = arith.constant 0 : index
    %27 = vector.load %arg4[%c0_10, %c0_11] : memref<32x96xbf16, #tpu.memory_space<vmem>>, vector<32x96xbf16>
    %cst_12 = arith.constant dense<0.000000e+00> : vector<8x96xf32>
    %28 = tpu.matmul %26, %27, %cst_12 {dimension_numbers = #tpu.dot_dimension_numbers<[1], [0], [0], [1], [0, 0, 1, 1], [], []>} : vector<8x32xbf16>, vector<32x96xbf16>, vector<8x96xf32> -> vector<8x96xf32>
    %c0_13 = arith.constant 0 : index
    %c0_14 = arith.constant 0 : index
    %29 = vector.load %arg5[%c0_13, %c0_14] : memref<1x96xf32, #tpu.memory_space<vmem>>, vector<1x96xf32>
    %30 = vector.broadcast %29 : vector<1x96xf32> to vector<8x96xf32>
    %31 = arith.addf %28, %30 : vector<8x96xf32>
    %32 = vector.extract_strided_slice %31 {offsets = [0, 0], sizes = [8, 32], strides = [1, 1]} : vector<8x96xf32> to vector<8x32xf32>
    %33 = vector.shape_cast %32 : vector<8x32xf32> to vector<1x1x8x32xf32>
    %34 = vector.extract_strided_slice %33 {offsets = [0, 0, 0, 0], sizes = [1, 1, 8, 8], strides = [1, 1, 1, 1]} : vector<1x1x8x32xf32> to vector<1x1x8x8xf32>
    %35 = vector.extract_strided_slice %33 {offsets = [0, 0, 0, 8], sizes = [1, 1, 8, 8], strides = [1, 1, 1, 1]} : vector<1x1x8x32xf32> to vector<1x1x8x8xf32>
    %36 = vector.extract_strided_slice %33 {offsets = [0, 0, 0, 16], sizes = [1, 1, 8, 8], strides = [1, 1, 1, 1]} : vector<1x1x8x32xf32> to vector<1x1x8x8xf32>
    %37 = vector.extract_strided_slice %33 {offsets = [0, 0, 0, 24], sizes = [1, 1, 8, 8], strides = [1, 1, 1, 1]} : vector<1x1x8x32xf32> to vector<1x1x8x8xf32>
    %38 = tpu.concatenate %34, %35, %36, %37 in 1 : vector<1x1x8x8xf32>, vector<1x1x8x8xf32>, vector<1x1x8x8xf32>, vector<1x1x8x8xf32> -> vector<1x4x8x8xf32>
    %39 = vector.shape_cast %38 : vector<1x4x8x8xf32> to vector<4x8x8xf32>
    %40 = arith.truncf %39 : vector<4x8x8xf32> to vector<4x8x8xbf16>
    %41 = vector.extract_strided_slice %31 {offsets = [0, 32], sizes = [8, 32], strides = [1, 1]} : vector<8x96xf32> to vector<8x32xf32>
    %42 = vector.shape_cast %41 : vector<8x32xf32> to vector<1x1x8x32xf32>
    %43 = vector.extract_strided_slice %42 {offsets = [0, 0, 0, 0], sizes = [1, 1, 8, 8], strides = [1, 1, 1, 1]} : vector<1x1x8x32xf32> to vector<1x1x8x8xf32>
    %44 = vector.extract_strided_slice %42 {offsets = [0, 0, 0, 8], sizes = [1, 1, 8, 8], strides = [1, 1, 1, 1]} : vector<1x1x8x32xf32> to vector<1x1x8x8xf32>
    %45 = vector.extract_strided_slice %42 {offsets = [0, 0, 0, 16], sizes = [1, 1, 8, 8], strides = [1, 1, 1, 1]} : vector<1x1x8x32xf32> to vector<1x1x8x8xf32>
    %46 = vector.extract_strided_slice %42 {offsets = [0, 0, 0, 24], sizes = [1, 1, 8, 8], strides = [1, 1, 1, 1]} : vector<1x1x8x32xf32> to vector<1x1x8x8xf32>
    %47 = tpu.concatenate %43, %44, %45, %46 in 1 : vector<1x1x8x8xf32>, vector<1x1x8x8xf32>, vector<1x1x8x8xf32>, vector<1x1x8x8xf32> -> vector<1x4x8x8xf32>
    %48 = vector.shape_cast %47 : vector<1x4x8x8xf32> to vector<4x8x8xf32>
    %49 = arith.truncf %48 : vector<4x8x8xf32> to vector<4x8x8xbf16>
    %50 = vector.extract_strided_slice %31 {offsets = [0, 64], sizes = [8, 32], strides = [1, 1]} : vector<8x96xf32> to vector<8x32xf32>
    %51 = vector.shape_cast %50 : vector<8x32xf32> to vector<1x1x8x32xf32>
    %52 = vector.extract_strided_slice %51 {offsets = [0, 0, 0, 0], sizes = [1, 1, 8, 8], strides = [1, 1, 1, 1]} : vector<1x1x8x32xf32> to vector<1x1x8x8xf32>
    %53 = vector.extract_strided_slice %51 {offsets = [0, 0, 0, 8], sizes = [1, 1, 8, 8], strides = [1, 1, 1, 1]} : vector<1x1x8x32xf32> to vector<1x1x8x8xf32>
    %54 = vector.extract_strided_slice %51 {offsets = [0, 0, 0, 16], sizes = [1, 1, 8, 8], strides = [1, 1, 1, 1]} : vector<1x1x8x32xf32> to vector<1x1x8x8xf32>
    %55 = vector.extract_strided_slice %51 {offsets = [0, 0, 0, 24], sizes = [1, 1, 8, 8], strides = [1, 1, 1, 1]} : vector<1x1x8x32xf32> to vector<1x1x8x8xf32>
    %56 = tpu.concatenate %52, %53, %54, %55 in 1 : vector<1x1x8x8xf32>, vector<1x1x8x8xf32>, vector<1x1x8x8xf32>, vector<1x1x8x8xf32> -> vector<1x4x8x8xf32>
    %57 = vector.shape_cast %56 : vector<1x4x8x8xf32> to vector<4x8x8xf32>
    %58 = arith.truncf %57 : vector<4x8x8xf32> to vector<4x8x8xbf16>
    "tpu.trace_start"() <{level = 10 : i32, message = "bqd,bkd->bqk"}> : () -> ()
    %cst_15 = arith.constant dense<0.000000e+00> : vector<4x8x8xf32>
    %59 = tpu.matmul %40, %49, %cst_15 {dimension_numbers = #tpu.dot_dimension_numbers<[2], [2], [1], [1], [0, 0, 0, 1, 1, 1], [0], [0]>} : vector<4x8x8xbf16>, vector<4x8x8xbf16>, vector<4x8x8xf32> -> vector<4x8x8xf32>
    "tpu.trace_stop"() : () -> ()
    %cst_16 = arith.constant dense<0xFF800000> : vector<4x8xf32>
    %60 = vector.multi_reduction <maximumf>, %59, %cst_16 [2] : vector<4x8x8xf32> to vector<4x8xf32>
    %61 = vector.shape_cast %60 : vector<4x8xf32> to vector<4x8x1xf32>
    %62 = vector.broadcast %61 : vector<4x8x1xf32> to vector<4x8x8xf32>
    %63 = arith.subf %59, %62 : vector<4x8x8xf32>
    %64 = math.exp %63 : vector<4x8x8xf32>
    %cst_17 = arith.constant dense<0.000000e+00> : vector<4x8xf32>
    %65 = vector.multi_reduction <add>, %64, %cst_17 [2] : vector<4x8x8xf32> to vector<4x8xf32>
    %66 = vector.shape_cast %65 : vector<4x8xf32> to vector<4x8x1xf32>
    %67 = tpu.reciprocal %66 {approx = true} : vector<4x8x1xf32> -> vector<4x8x1xf32>
    %68 = vector.broadcast %67 : vector<4x8x1xf32> to vector<4x8x8xf32>
    %69 = arith.mulf %64, %68 : vector<4x8x8xf32>
    %70 = arith.truncf %69 : vector<4x8x8xf32> to vector<4x8x8xbf16>
    "tpu.trace_start"() <{level = 10 : i32, message = "bqk,bkd->bqd"}> : () -> ()
    %cst_18 = arith.constant dense<0.000000e+00> : vector<4x8x8xf32>
    %71 = tpu.matmul %70, %58, %cst_18 {dimension_numbers = #tpu.dot_dimension_numbers<[2], [1], [1], [2], [0, 0, 0, 1, 1, 2], [0], [0]>} : vector<4x8x8xbf16>, vector<4x8x8xbf16>, vector<4x8x8xf32> -> vector<4x8x8xf32>
    "tpu.trace_stop"() : () -> ()
    %72 = vector.shape_cast %71 : vector<4x8x8xf32> to vector<1x4x8x8xf32>
    %73 = vector.extract_strided_slice %72 {offsets = [0, 0, 0, 0], sizes = [1, 1, 8, 8], strides = [1, 1, 1, 1]} : vector<1x4x8x8xf32> to vector<1x1x8x8xf32>
    %74 = vector.shape_cast %73 : vector<1x1x8x8xf32> to vector<1x8x8xf32>
    %75 = vector.extract_strided_slice %72 {offsets = [0, 1, 0, 0], sizes = [1, 1, 8, 8], strides = [1, 1, 1, 1]} : vector<1x4x8x8xf32> to vector<1x1x8x8xf32>
    %76 = vector.shape_cast %75 : vector<1x1x8x8xf32> to vector<1x8x8xf32>
    %77 = vector.extract_strided_slice %72 {offsets = [0, 2, 0, 0], sizes = [1, 1, 8, 8], strides = [1, 1, 1, 1]} : vector<1x4x8x8xf32> to vector<1x1x8x8xf32>
    %78 = vector.shape_cast %77 : vector<1x1x8x8xf32> to vector<1x8x8xf32>
    %79 = vector.extract_strided_slice %72 {offsets = [0, 3, 0, 0], sizes = [1, 1, 8, 8], strides = [1, 1, 1, 1]} : vector<1x4x8x8xf32> to vector<1x1x8x8xf32>
    %80 = vector.shape_cast %79 : vector<1x1x8x8xf32> to vector<1x8x8xf32>
    %81 = tpu.concatenate %74, %76, %78, %80 in 2 : vector<1x8x8xf32>, vector<1x8x8xf32>, vector<1x8x8xf32>, vector<1x8x8xf32> -> vector<1x8x32xf32>
    %82 = vector.shape_cast %81 : vector<1x8x32xf32> to vector<8x32xf32>
    %83 = arith.truncf %82 : vector<8x32xf32> to vector<8x32xbf16>
    %c0_19 = arith.constant 0 : index
    %c0_20 = arith.constant 0 : index
    %84 = vector.load %arg6[%c0_19, %c0_20] : memref<32x32xbf16, #tpu.memory_space<vmem>>, vector<32x32xbf16>
    %cst_21 = arith.constant dense<0.000000e+00> : vector<8x32xf32>
    %85 = tpu.matmul %83, %84, %cst_21 {dimension_numbers = #tpu.dot_dimension_numbers<[1], [0], [0], [1], [0, 0, 1, 1], [], []>} : vector<8x32xbf16>, vector<32x32xbf16>, vector<8x32xf32> -> vector<8x32xf32>
    %c0_22 = arith.constant 0 : index
    %c0_23 = arith.constant 0 : index
    %86 = vector.load %arg7[%c0_22, %c0_23] : memref<1x32xf32, #tpu.memory_space<vmem>>, vector<1x32xf32>
    %87 = vector.broadcast %86 : vector<1x32xf32> to vector<8x32xf32>
    %88 = arith.addf %85, %87 : vector<8x32xf32>
    %89 = arith.addf %1, %88 : vector<8x32xf32>
    %c0_24 = arith.constant 0 : index
    %c0_25 = arith.constant 0 : index
    %90 = vector.load %arg8[%c0_24, %c0_25] : memref<1x32xf32, #tpu.memory_space<vmem>>, vector<1x32xf32>
    %c0_26 = arith.constant 0 : index
    %c0_27 = arith.constant 0 : index
    %91 = vector.load %arg9[%c0_26, %c0_27] : memref<1x32xf32, #tpu.memory_space<vmem>>, vector<1x32xf32>
    %cst_28 = arith.constant dense<0.000000e+00> : vector<8xf32>
    %92 = vector.multi_reduction <add>, %89, %cst_28 [1] : vector<8x32xf32> to vector<8xf32>
    %93 = vector.shape_cast %92 : vector<8xf32> to vector<8x1xf32>
    %cst_29 = arith.constant 3.200000e+01 : f32
    %94 = vector.broadcast %cst_29 : f32 to vector<8x1xf32>
    %95 = arith.divf %93, %94 : vector<8x1xf32>
    %96 = vector.broadcast %95 : vector<8x1xf32> to vector<8x32xf32>
    %97 = arith.subf %89, %96 : vector<8x32xf32>
    %98 = arith.mulf %97, %97 : vector<8x32xf32>
    %cst_30 = arith.constant dense<0.000000e+00> : vector<8xf32>
    %99 = vector.multi_reduction <add>, %98, %cst_30 [1] : vector<8x32xf32> to vector<8xf32>
    %100 = vector.shape_cast %99 : vector<8xf32> to vector<8x1xf32>
    %cst_31 = arith.constant 3.200000e+01 : f32
    %101 = vector.broadcast %cst_31 : f32 to vector<8x1xf32>
    %102 = arith.divf %100, %101 : vector<8x1xf32>
    %103 = vector.broadcast %95 : vector<8x1xf32> to vector<8x32xf32>
    %104 = arith.subf %89, %103 : vector<8x32xf32>
    %cst_32 = arith.constant 9.99999974E-6 : f32
    %105 = vector.broadcast %cst_32 : f32 to vector<8x1xf32>
    %106 = arith.addf %102, %105 : vector<8x1xf32>
    %107 = math.rsqrt %106 : vector<8x1xf32>
    %108 = vector.broadcast %107 : vector<8x1xf32> to vector<8x32xf32>
    %109 = arith.mulf %104, %108 : vector<8x32xf32>
    %110 = vector.broadcast %90 : vector<1x32xf32> to vector<8x32xf32>
    %111 = arith.mulf %109, %110 : vector<8x32xf32>
    %112 = vector.broadcast %91 : vector<1x32xf32> to vector<8x32xf32>
    %113 = arith.addf %111, %112 : vector<8x32xf32>
    %114 = arith.truncf %113 : vector<8x32xf32> to vector<8x32xbf16>
    %c0_33 = arith.constant 0 : index
    %c0_34 = arith.constant 0 : index
    %115 = vector.load %arg10[%c0_33, %c0_34] : memref<32x64xbf16, #tpu.memory_space<vmem>>, vector<32x64xbf16>
    %cst_35 = arith.constant dense<0.000000e+00> : vector<8x64xf32>
    %116 = tpu.matmul %114, %115, %cst_35 {dimension_numbers = #tpu.dot_dimension_numbers<[1], [0], [0], [1], [0, 0, 1, 1], [], []>} : vector<8x32xbf16>, vector<32x64xbf16>, vector<8x64xf32> -> vector<8x64xf32>
    %c0_36 = arith.constant 0 : index
    %c0_37 = arith.constant 0 : index
    %117 = vector.load %arg11[%c0_36, %c0_37] : memref<1x64xf32, #tpu.memory_space<vmem>>, vector<1x64xf32>
    %118 = vector.broadcast %117 : vector<1x64xf32> to vector<8x64xf32>
    %119 = arith.addf %116, %118 : vector<8x64xf32>
    %cst_38 = arith.constant 0.000000e+00 : f32
    %120 = vector.broadcast %cst_38 : f32 to vector<8x64xf32>
    %121 = arith.maximumf %119, %120 : vector<8x64xf32>
    %122 = arith.truncf %121 : vector<8x64xf32> to vector<8x64xbf16>
    %c0_39 = arith.constant 0 : index
    %c0_40 = arith.constant 0 : index
    %123 = vector.load %arg12[%c0_39, %c0_40] : memref<64x32xbf16, #tpu.memory_space<vmem>>, vector<64x32xbf16>
    %cst_41 = arith.constant dense<0.000000e+00> : vector<8x32xf32>
    %124 = tpu.matmul %122, %123, %cst_41 {dimension_numbers = #tpu.dot_dimension_numbers<[1], [0], [0], [1], [0, 0, 1, 1], [], []>} : vector<8x64xbf16>, vector<64x32xbf16>, vector<8x32xf32> -> vector<8x32xf32>
    %c0_42 = arith.constant 0 : index
    %c0_43 = arith.constant 0 : index
    %125 = vector.load %arg13[%c0_42, %c0_43] : memref<1x32xf32, #tpu.memory_space<vmem>>, vector<1x32xf32>
    %126 = vector.broadcast %125 : vector<1x32xf32> to vector<8x32xf32>
    %127 = arith.addf %124, %126 : vector<8x32xf32>
    %128 = arith.addf %89, %127 : vector<8x32xf32>
    %129 = vector.shape_cast %128 : vector<8x32xf32> to vector<1x8x32xf32>
    %c0_44 = arith.constant 0 : index
    %c0_45 = arith.constant 0 : index
    %c0_46 = arith.constant 0 : index
    %130 = vector.load %arg14[%c0_44, %c0_45, %c0_46] : memref<1x8x32xf32, #tpu.memory_space<vmem>>, vector<1x8x32xf32>
    tpu.vector_store %arg14[%c0_44, %c0_45, %c0_46], %129 {strides = array<i32>} : memref<1x8x32xf32, #tpu.memory_space<vmem>>, vector<1x8x32xf32>,
    return
  }
  func.func @transform_0(%arg0: i32) -> (i32, i32, i32) {
    %c0_i32 = arith.constant 0 : i32
    %c0_i32_0 = arith.constant 0 : i32
    %c0_i32_1 = arith.constant 0 : i32
    return %arg0, %c0_i32, %c0_i32_0 : i32, i32, i32
  }
  func.func @transform_1(%arg0: i32) -> (i32, i32) {
    %c0_i32 = arith.constant 0 : i32
    %c0_i32_0 = arith.constant 0 : i32
    %c0_i32_1 = arith.constant 0 : i32
    return %c0_i32, %c0_i32_0 : i32, i32
  }
  func.func @transform_2(%arg0: i32) -> (i32, i32) {
    %c0_i32 = arith.constant 0 : i32
    %c0_i32_0 = arith.constant 0 : i32
    %c0_i32_1 = arith.constant 0 : i32
    return %c0_i32, %c0_i32_0 : i32, i32
  }
  func.func @transform_3(%arg0: i32) -> (i32, i32) {
    %c0_i32 = arith.constant 0 : i32
    %c0_i32_0 = arith.constant 0 : i32
    %c0_i32_1 = arith.constant 0 : i32
    return %c0_i32, %c0_i32_0 : i32, i32
  }
  func.func @transform_4(%arg0: i32) -> (i32, i32) {
    %c0_i32 = arith.constant 0 : i32
    %c0_i32_0 = arith.constant 0 : i32
    %c0_i32_1 = arith.constant 0 : i32
    return %c0_i32, %c0_i32_0 : i32, i32
  }
  func.func @transform_5(%arg0: i32) -> (i32, i32) {
    %c0_i32 = arith.constant 0 : i32
    %c0_i32_0 = arith.constant 0 : i32
    %c0_i32_1 = arith.constant 0 : i32
    return %c0_i32, %c0_i32_0 : i32, i32
  }
  func.func @transform_6(%arg0: i32) -> (i32, i32) {
    %c0_i32 = arith.constant 0 : i32
    %c0_i32_0 = arith.constant 0 : i32
    %c0_i32_1 = arith.constant 0 : i32
    return %c0_i32, %c0_i32_0 : i32, i32
  }
  func.func @transform_7(%arg0: i32) -> (i32, i32) {
    %c0_i32 = arith.constant 0 : i32
    %c0_i32_0 = arith.constant 0 : i32
    %c0_i32_1 = arith.constant 0 : i32
    return %c0_i32, %c0_i32_0 : i32, i32
  }
  func.func @transform_8(%arg0: i32) -> (i32, i32) {
    %c0_i32 = arith.constant 0 : i32
    %c0_i32_0 = arith.constant 0 : i32
    %c0_i32_1 = arith.constant 0 : i32
    return %c0_i32, %c0_i32_0 : i32, i32
  }
  func.func @transform_9(%arg0: i32) -> (i32, i32) {
    %c0_i32 = arith.constant 0 : i32
    %c0_i32_0 = arith.constant 0 : i32
    %c0_i32_1 = arith.constant 0 : i32
    return %c0_i32, %c0_i32_0 : i32, i32
  }
  func.func @transform_10(%arg0: i32) -> (i32, i32) {
    %c0_i32 = arith.constant 0 : i32
    %c0_i32_0 = arith.constant 0 : i32
    %c0_i32_1 = arith.constant 0 : i32
    return %c0_i32, %c0_i32_0 : i32, i32
  }
  func.func @transform_11(%arg0: i32) -> (i32, i32) {
    %c0_i32 = arith.constant 0 : i32
    %c0_i32_0 = arith.constant 0 : i32
    %c0_i32_1 = arith.constant 0 : i32
    return %c0_i32, %c0_i32_0 : i32, i32
  }
  func.func @transform_12(%arg0: i32) -> (i32, i32) {
    %c0_i32 = arith.constant 0 : i32
    %c0_i32_0 = arith.constant 0 : i32
    %c0_i32_1 = arith.constant 0 : i32
    return %c0_i32, %c0_i32_0 : i32, i32
  }
  func.func @transform_13(%arg0: i32) -> (i32, i32, i32) {
    %c0_i32 = arith.constant 0 : i32
    %c0_i32_0 = arith.constant 0 : i32
    %c0_i32_1 = arith.constant 0 : i32
    return %arg0, %c0_i32, %c0_i32_0 : i32, i32, i32
  }
}

</mosaic_0001>

<bundles_post_ra>
// kernel: tpu_custom_call.1
= control target key start
LH: loop header
LB: loop body
LE: loop exit
PB: predicated region body
PF: predicated region fallthrough
CT: control target
= control target key end

     0   :  { %s2338_s0 = inlined_call_operand.vmem [shape: f32[2,8,32], index: 0, kind: input, shape index: {}]   ;;  %s2339_s1 = inlined_call_operand.vmem [shape: f32[1,32], index: 1, kind: input, shape index: {}]   ;;  %s2340_s2 = inlined_call_operand.vmem [shape: f32[1,32], index: 2, kind: input, shape index: {}]   ;;  %s2341_s3 = inlined_call_operand.vmem [shape: bf16[32,96], index: 3, kind: input, shape index: {}]   ;;  %s2342_s4 = inlined_call_operand.hbm [shape: f32[1,96], index: 4, kind: input, shape index: {}]   ;;  %s2343_s5 = inlined_call_operand.vmem [shape: bf16[32,32], index: 5, kind: input, shape index: {}]   ;;  %s2344_s6 = inlined_call_operand.hbm [shape: f32[1,32], index: 6, kind: input, shape index: {}]   ;;  %s2345_s7 = inlined_call_operand.hbm [shape: f32[1,32], index: 7, kind: input, shape index: {}]   ;;  %s2346_s8 = inlined_call_operand.hbm [shape: f32[1,32], index: 8, kind: input, shape index: {}]   ;;  %s2347_s9 = inlined_call_operand.vmem [shape: bf16[32,64], index: 9, kind: input, shape index: {}]   ;;  %s2348_s10 = inlined_call_operand.vmem [shape: f32[1,64], index: 10, kind: input, shape index: {}]   ;;  %s2349_s11 = inlined_call_operand.vmem [shape: bf16[64,32], index: 11, kind: input, shape index: {}]   ;;  %s2350_s12 = inlined_call_operand.vmem [shape: f32[1,32], index: 12, kind: input, shape index: {}]   ;;  %s2351_s13 = inlined_call_operand.hbm [shape: f32[2,8,32], index: 13, kind: output, shape index: {}]  }
   0x1   :  { %2362 = sst [smem:[#allocation21_spill]] %s2351_s13 }
   0x2   :  { %18 = vsyncpa [#allocation3], 0 }
   0x3   :  { %19 = vsyncpa [#allocation6], 0 }
   0x4   :  { %20 = vsyncpa [#allocation9], 0 }
   0x5   :  { %21 = vsyncpa [#allocation4], 0 }
   0x6   :  { %23 = vsyncpa [#allocation4 + $0x1], 0  ;;  %s1976_s25 = smov 0   ;;  %s1978_s26 = smov 0  }
   0x7   :  { %s1980_s27 = smov 0   ;;  %s1982_s28 = smov 0  }
   0x8 LB: > { %2363 = sst [smem:[#allocation15_spill]] %s1877_s25  ;;  %s1997_s29 = sadd.s32 4294967295, %s1889_s28   ;;  %s1889_s28 = sphi %s1982_s28, %s2388_s28   ;;  %s1885_s27 = sphi %s1980_s27, %s2390_s27   ;;  %s1881_s26 = sphi %s1978_s26, %s2392_s26   ;;  %s1877_s25 = sphi %s1976_s25, %s2391_s25  }
   0x9   : > { %2364 = sst [smem:[#allocation16_spill]] %s1885_s27  ;;  %s1421_s30 = sadd.s32 4294967294, %s1889_s28  }
   0xa   : > { %2365 = sst [smem:[#allocation17_spill]] %s1889_s28  ;;  %s2001_s14 = sadd.s32 1, %s1889_s28  }
   0xb   : > { %2366 = sst [smem:[#allocation18_spill]] %s2001_s14  ;;  %s314_s15 = sadd.s32 1, %s1885_s27 }
   0xc   : > { %s311_s16 = ssub.s32 %s1889_s28, %s2001_s14  ;;  %p324_p0 = scmp.ne.s32.totalorder %s1885_s27, %s1881_s26 }
   0xd   : > { %p312_p1 = scmp.eq.s32.totalorder %s311_s16, 0  ;;  %p325_p2 = scmp.eq.s32.totalorder %s1997_s29, 1 }
   0xe   : > { %p330_p3 = scmp.ne.s32.totalorder %s1881_s26, %s1877_s25  ;;  %p331_p4 = scmp.eq.s32.totalorder %s1421_s30, 1 }
   0xf   : > { %s2012_s17 = scalar_select %p312_p1, %s1885_s27, %s314_s15  }
  0x10   : > { %p2014_p5 = por %p325_p2, %p324_p0  ;;  %p2018_p6 = por %p331_p4, %p330_p3 }
  0x11   : > { %2367 = sst [smem:[#allocation19_spill]] %s2012_s17  ;;  %p1422_p7 = scmp.ge.s32.totalorder %s1889_s28, 1 }
  0x12   : > { %s2368_s18 = scalar_select %p2014_p5, 1, 0 }
  0x13   : > { %s2369_s19 = scalar_select %p2018_p6, 1, 0 }
  0x14   : > { %p338_p8 = scmp.lt.s32.totalorder %s1889_s28, 3  ;;  %p2357_p9 = scmp.eq.s32.totalorder %s1997_s29, 0 }
  0x15   : > { %2370 = sst [smem:[#allocation20_spill]] %s2369_s19  ;;  %s1891_s21 = smov [#allocation5]  }
  0x16   : > { %p2025_p10 = pnand %p1422_p7, %p338_p8  ;;  %s374_s22 = sshll.u32 %s1891_s21, 4  ;;  %s375_s22 = int_to_ptr.vmem [resolvable:$true] %s374_s22 }
  0x17   : > { %s1892_s23 = smov [#allocation2]   ;;  %s1893_s15 = smov [#allocation7]  }
  0x18   : > { %s2371_s20 = scalar_select %p2025_p10, 1, 0 }
  0x19   : > { %p1601_p11 = pneg %p2025_p10  ;;  %s360_s24 = sshll.u32 %s1892_s23, 4  ;;  %s2037_s24 = int_to_ptr.vmem [resolvable:$true] %s360_s24 }
  0x1a   : > { %s385_s16 = sshll.u32 %s1893_s15, 4  ;;  %s1703_s21 = scalar_lea.hbm %s2344_s6, 16  ;;  %s2039_s16 = int_to_ptr.vmem [resolvable:$true] %s385_s16 }
  0x1b   : > { %p2033_p12 = pnand %p2357_p9, %p1601_p11  ;;  %p1704_p13 = scmp.ne.s32.totalorder %s2344_s6, %s1703_s21 }
  0x1c   : > { %p1710_p3 = scmp.lt.u32.totalorder %s1703_s21, %s2344_s6 }
  0x1d   : > { %p2049_p0 = pneg %p2033_p12 }
  0x1f   : > { %p1706_p1 = pnand %p2049_p0, %p1704_p13 }
  0x21   : > { %p1707_p2 = pneg %p1706_p1 }
  0x23   : > { %p1712_p4 = pnand %p1710_p3, %p1707_p2 }
  0x25   : > { %1715 = shalt.err (!%p1712_p4)
}
  0x26   : > { %s1716_s27 = scalar_lea.vmem %s375_s22, 16  ;;  %s1723_s14 = scalar_lea.vmem %s375_s22, 32 }
  0x27   : > { %p1717_p7 = scmp.ne.s32.totalorder %s375_s22, %s1716_s27  ;;  %p1724_p9 = scmp.lt.s32.totalorder %s375_s22, %s375_s22 }
  0x28   : > { %p1725_p6 = scmp.lt.s32.totalorder %s1723_s14, %s1716_s27 }
  0x29   : > { %p1719_p8 = pnand %p1717_p7, %p2049_p0 }
  0x2a   : > { %p1726_p5 = por %p1725_p6, %p1724_p9 }
  0x2b   : > { %p1720_p11 = pneg %p1719_p8 }
  0x2d   : > { %p1727_p10 = pnand %p1726_p5, %p1720_p11 }
  0x2f   : > { %1730 = shalt.err (!%p1727_p10)
}
  0x30   : > { %1607 = dma.hbm_to_vmem [thread:$0]  (!%p2033_p12), %s2344_s6, 16, %s375_s22, [#allocation6]  }
  0x31   : > { %s1731_s15 = scalar_lea.hbm %s2342_s4, 16 }
  0x32   : > { %p1732_p13 = scmp.ne.s32.totalorder %s2342_s4, %s1731_s15  ;;  %p1738_p5 = scmp.lt.u32.totalorder %s1731_s15, %s2342_s4 }
  0x34   : > { %p1734_p1 = pnand %p1732_p13, %p2049_p0 }
  0x36   : > { %p1735_p6 = pneg %p1734_p1 }
  0x38   : > { %p1740_p9 = pnand %p1738_p5, %p1735_p6 }
  0x3a   : > { %1743 = shalt.err (!%p1740_p9)
}
  0x3b   : > { %s1744_s22 = scalar_lea.vmem %s2037_s24, 16  ;;  %s1751_s13 = scalar_lea.vmem %s2037_s24, 32 }
  0x3c   : > { %p1745_p10 = scmp.ne.s32.totalorder %s2037_s24, %s1744_s22  ;;  %p1752_p4 = scmp.lt.s32.totalorder %s2037_s24, %s2037_s24 }
  0x3d   : > { %p1753_p7 = scmp.lt.s32.totalorder %s1751_s13, %s1744_s22 }
  0x3e   : > { %p1747_p2 = pnand %p1745_p10, %p2049_p0 }
  0x3f   : > { %p1754_p8 = por %p1753_p7, %p1752_p4 }
  0x40   : > { %p1748_p3 = pneg %p1747_p2 }
  0x42   : > { %p1755_p11 = pnand %p1754_p8, %p1748_p3 }
  0x44   : > { %1758 = shalt.err (!%p1755_p11)
}
  0x45   : > { %1604 = dma.hbm_to_vmem [thread:$0]  (!%p2033_p12), %s2342_s4, 16, %s2037_s24, [#allocation3]  }
  0x46   : > { %s1759_s21 = scalar_lea.hbm %s2345_s7, 16 }
  0x47   : > { %p1760_p13 = scmp.ne.s32.totalorder %s2345_s7, %s1759_s21  ;;  %p1766_p5 = scmp.lt.u32.totalorder %s1759_s21, %s2345_s7 }
  0x49   : > { %p1762_p1 = pnand %p1760_p13, %p2049_p0 }
  0x4b   : > { %p1763_p6 = pneg %p1762_p1 }
  0x4d   : > { %p1768_p9 = pnand %p1766_p5, %p1763_p6 }
  0x4f   : > { %1771 = shalt.err (!%p1768_p9)
}
  0x50   : > { %s1772_s24 = scalar_lea.vmem %s2039_s16, 16  ;;  %s1779_s13 = scalar_lea.vmem %s2039_s16, 32 }
  0x51   : > { %p1773_p10 = scmp.ne.s32.totalorder %s2039_s16, %s1772_s24  ;;  %p1780_p4 = scmp.lt.s32.totalorder %s2039_s16, %s2039_s16 }
  0x52   : > { %p1781_p7 = scmp.lt.s32.totalorder %s1779_s13, %s1772_s24 }
  0x53   : > { %p1775_p2 = pnand %p1773_p10, %p2049_p0 }
  0x54   : > { %p1782_p8 = por %p1781_p7, %p1780_p4 }
  0x55   : > { %p1776_p3 = pneg %p1775_p2 }
  0x57   : > { %p1783_p11 = pnand %p1782_p8, %p1776_p3 }
  0x59   : > { %1786 = shalt.err (!%p1783_p11)
}
  0x5a   : > { %1610 = dma.hbm_to_vmem [thread:$0]  (!%p2033_p12), %s2345_s7, 16, %s2039_s16, [#allocation6]  }
  0x5b   : > { %s1894_s19 = smov [#allocation8]   ;;  %s1787_s27 = scalar_lea.hbm %s2346_s8, 16 }
  0x5c   : > { %s396_s25 = sshll.u32 %s1894_s19, 4  ;;  %p1788_p13 = scmp.ne.s32.totalorder %s2346_s8, %s1787_s27  ;;  %s397_s25 = int_to_ptr.vmem [resolvable:$true] %s396_s25 }
  0x5d   : > { %p1794_p5 = scmp.lt.u32.totalorder %s1787_s27, %s2346_s8 }
  0x5e   : > { %p1790_p1 = pnand %p1788_p13, %p2049_p0 }
  0x60   : > { %p1791_p6 = pneg %p1790_p1 }
  0x62   : > { %p1796_p9 = pnand %p1794_p5, %p1791_p6 }
  0x64   : > { %1799 = shalt.err (!%p1796_p9)
}
  0x65   : > { %s1800_s16 = scalar_lea.vmem %s397_s25, 16  ;;  %s1807_s28 = scalar_lea.vmem %s397_s25, 32 }
  0x66   : > { %p1801_p10 = scmp.ne.s32.totalorder %s397_s25, %s1800_s16  ;;  %p1808_p4 = scmp.lt.s32.totalorder %s397_s25, %s397_s25 }
  0x67   : > { %p1809_p7 = scmp.lt.s32.totalorder %s1807_s28, %s1800_s16 }
  0x68   : > { %p1803_p2 = pnand %p1801_p10, %p2049_p0 }
  0x69   : > { %p1810_p8 = por %p1809_p7, %p1808_p4 }
  0x6a   : > { %p1804_p3 = pneg %p1803_p2 }
  0x6c   : > { %p1811_p11 = pnand %p1810_p8, %p1804_p3 }
  0x6e   : > { %1814 = shalt.err (!%p1811_p11)
}
  0x6f   : > { %1613 = dma.hbm_to_vmem [thread:$0]  (!%p2033_p12), %s2346_s8, 16, %s397_s25, [#allocation9]  }
  0x70   : > { %p2374_p13 = scmp.ne.s32.totalorder %s2371_s20, 0 }
  0x71   : > { %p2375_p1 = scmp.eq.s32.totalorder (!%p2374_p13), %s1997_s29, 0 }
  0x72   : > { %428 = sbr.rel (%p2374_p13) target bundleno = 2751 (0xabf), region = 72 }
  0x79   : > { %1860 = dma.done.wait (%p2375_p1), [#allocation3], 16   ;;  %p2376_p0 = pmov %p2375_p1 }
  0x7b   : > { %1862 = vsyncadd (%p2376_p0), [#allocation3], 4294967280  ;;  %p2377_p6 = pmov %p2376_p0 }
  0x7c   : > { %p2378_p5 = pmov %p2376_p0 }
  0x7d   : > { %1864 = dma.done.wait (%p2377_p6), [#allocation6], 32  }
  0x7e   : > { %1866 = vsyncadd (%p2378_p5), [#allocation6], 4294967264  ;;  %p2379_p9 = pmov %p2376_p0 }
  0x7f   : > { %p2380_p12 = pmov %p2376_p0 }
  0x80   : > { %1868 = dma.done.wait (%p2379_p9), [#allocation9], 16  }
  0x81   : > { %1870 = vsyncadd (%p2380_p12), [#allocation9], 4294967280  ;;  %p483_p10 = scmp.lt.s32.totalorder %s1997_s29, 1  ;;  %vm491_vm0 = vcmask 261120   ;;  %v1673_v7 = vld [vmem:[%s2341_s3] sm:$0xff]   ;;  %v1895_v8 = vmov 0.0  }
  0x82   : > { %1499 = vmatprep.subr.bf16.mxu0 %v1895_v8  ;;  %vm1896_vm1 = vmmov 0   ;;  %v1674_v9 = vld [vmem:[%s2341_s3 + $0x8] sm:$0xff]   ;;  %1507 = vmatprep.subr.bf16.mxu1 %v1895_v8  ;;  %v1435_v14 = vld [vmem:[%s2339_s1] ss:$0 sm:$0xff]  ;;  %s1897_s17 = smov 104   ;;  %s1898_s19 = smov 120  }
  0x83   : > { %s484_s20 = scalar_select %p483_p10, %s1997_s29, 1  ;;  %1503 = vmatprep.mubr.msk.bf16.mxu0 %vm1896_vm1, %v1895_v8  ;;  %1500 = vmatpush3.bf16.msra.mxu0 %v1673_v7  ;;  %v1436_v16 = vld [vmem:[%s2340_s2] ss:$0 sm:$0xff]  ;;  %vm604_vm2 = vcmask 64512   ;;  %vm851_vm3 = vcmask 1043456   ;;  %vm1052_vm4 = vcmask 130048  }
  0x84   : > { %1501 = vmatprep.subr.bf16.mxu0 %v1895_v8  ;;  %1509 = vmatprep.mubr.msk.bf16.mxu1 %vm1896_vm1, %v1895_v8  ;;  %v1437_v20 = vld [vmem:[#allocation2] ss:$0 sm:$0xff]  ;;  %s1901_s23 = smov 64   ;;  %s1902_s14 = smov 8   ;;  %vm1054_vm5 = vcmask 195584   ;;  %vm1261_vm6 = vcmask 523264  }
  0x85   : > { %s1434_s30 = sshll.u32 %s484_s20, 3  ;;  %s1899_s20 = smov 112  }
  0x86   : > { %s486_s21 = scalar_lea.vmem %s2338_s0, %s1434_s30  ;;  %s1900_s30 = smov 96  }
  0x87   : > { %v2150_v0 = vld [vmem:[%s486_s21] sm:$0xff]  ;;  %1502 = vmatpush3.bf16.msra.mxu0 %v1674_v9  ;;  %s1903_s22 = smov 16   ;;  %s1904_s24 = smov 24  }
  0x88   : > { %v492_v1 = vsel %vm491_vm0, %v2150_v0, 0.0  ;;  %1513 = vmatprep.subr.bf16.mxu0 %v1895_v8  ;;  %s2381_s25 = sld [smem:[#allocation21_spill]]  ;;  %p2383_p3 = scmp.ne.s32.totalorder %s2368_s18, 0 }
  0x89   : > { %493 = vadd.xlane.f32.xlu0 %v492_v1 }
  0x8e   : > { %s2382_s21 = smov %s2381_s25 }
 0x116   : > { %v494_v2 = vpop.xlane.xlu0 %493 }
 0x117   : > { %v496_v3 = vmul.f32 0.03125, %v494_v2 }
 0x119   : > { %v497_v4 = vsub.f32 %v2150_v0, %v496_v3 }
 0x11b   : > { %v498_v5 = vmul.f32 %v497_v4, %v497_v4 }
 0x11d   : > { %v499_v6 = vsel %vm491_vm0, %v498_v5, 0.0 }
 0x11e   : > { %500 = vadd.xlane.f32.xlu0 %v499_v6 }
 0x1ab   : > { %v501_v10 = vpop.xlane.xlu0 %500 }
 0x1ac   : > { %v502_v11 = vmul.f32 0.03125, %v501_v10 }
 0x1ae   : > { %v503_v12 = vadd.f32 1e-05, %v502_v11 }
 0x1b0   : > { %1683 = vrsqrt.f32 %v503_v12 }
 0x1ba   : > { %v1684_v13 = vpop.eup %1683 }
 0x1bb   : > { %v505_v15 = vmul.f32 %v1684_v13, %v497_v4 }
 0x1bd   : > { %v512_v17 = vmul.f32 %v1435_v14, %v505_v15 }
 0x1bf   : > { %v519_v18 = vadd.f32 %v1436_v16, %v512_v17 }
 0x1c1   : > { %v520_v19 = vpack.c.bf16 %v519_v18, %v519_v18 }
 0x1c3   : > { %1504 = vmatmul.mubr.msk.bf16.vlgmr.msra.gmra.mrb[0].mxu0 %vm491_vm0, %v520_v19 }
 0x1c4   : > { %1515 = vmatprep.mubr.msk.bf16.mxu0 %vm1896_vm1, %v1895_v8 }
 0x296   : > { %v581_v21 = vpop.f32.mrb[0].mxu0 }
 0x297   : > { %v582_v22 = vadd.f32 %v1437_v20, %v581_v21  ;;  %v1505_v23 = vpop.f32.mrb[1].mxu0 }
 0x298   : > { %v584_v24 = vpop.f32.mrb[2].mxu0 }
 0x299   : > { %594 = vrot.lane.b32.xlu0 %v582_v22, %s1897_s17  ;;  %588 = vrot.lane.b32.xlu1 %v582_v22, %s1898_s19  ;;  %v1506_v25 = vpop.f32.mrb[3].mxu0  ;;  %v597_v26 = vpack.c.bf16 %v582_v22, %v582_v22  ;;  %s1466_s17 = sshll.u32 %s1997_s29, 7 }
 0x29a   : > { %s2295_s15 = scalar_lea.hbm %s2381_s25, %s1466_s17 }
 0x29d   : > { %591 = vrot.lane.b32.xlu1 %v582_v22, %s1899_s20 }
 0x2a1   : > { %602 = vrot.lane.b32.xlu1 %v597_v26, %s1900_s30 }
 0x30b   : > { %v589_v27 = vpop.permute.xlu1 %588  ;;  %v595_v31 = vpop.permute.xlu0 %594 }
 0x30c   : > { %v2179_v28 = vpack.c.bf16 %v589_v27, %v589_v27  ;;  %v2185_v33 = vpack.c.bf16 %v595_v31, %v595_v31 }
 0x30e   : > { %652 = vrot.lane.b32.xlu1 %v2179_v28, %s1900_s30 }
 0x30f   : > { %v592_v29 = vpop.permute.xlu1 %591 }
 0x310   : > { %v2182_v30 = vpack.c.bf16 %v592_v29, %v592_v29 }
 0x312   : > { %701 = vrot.lane.b32.xlu1 %v2182_v30, %s1900_s30 }
 0x313   : > { %v603_v32 = vpop.permute.xlu1 %602 }
 0x314   : > { %v609_v34 = vsel %vm604_vm2, %v603_v32, 0 }
 0x315   : > { %1508 = vmatpush3.bf16.xpose.msra.mxu1 %v609_v34 }
 0x316   : > { %750 = vrot.lane.b32.xlu1 %v2185_v33, %s1900_s30  ;;  %1519 = vmatprep.subr.bf16.mxu1 %v1895_v8 }
 0x31c   : > { %1510 = vmatmul.mubr.msk.bf16.vlgmr.msra.gmra.mrb[0].mxu1 %vm604_vm2, %v597_v26 }
 0x31d   : > { %1521 = vmatprep.mubr.msk.bf16.mxu1 %vm1896_vm1, %v1895_v8 }
 0x380   : > { %v653_v35 = vpop.permute.xlu1 %652 }
 0x381   : > { %v658_v36 = vsel %vm604_vm2, %v653_v35, 0 }
 0x382   : > { %1514 = vmatpush3.bf16.xpose.msra.mxu0 %v658_v36 }
 0x383   : > { %1525 = vmatprep.subr.bf16.mxu0 %v1895_v8 }
 0x384   : > { %v702_v37 = vpop.permute.xlu1 %701 }
 0x385   : > { %v707_v38 = vsel %vm604_vm2, %v702_v37, 0 }
 0x386   : > { %1520 = vmatpush3.bf16.xpose.msra.mxu1 %v707_v38 }
 0x387   : > { %1531 = vmatprep.subr.bf16.mxu1 %v1895_v8 }
 0x388   : > { %v751_v39 = vpop.permute.xlu1 %750 }
 0x389   : > { %v756_v40 = vsel %vm604_vm2, %v751_v39, 0  ;;  %1516 = vmatmul.mubr.msk.bf16.vlgmr.msra.gmra.mrb[4].mxu0 %vm604_vm2, %v2179_v28 }
 0x38a   : > { %1526 = vmatpush3.bf16.xpose.msra.mxu0 %v756_v40  ;;  %1527 = vmatprep.mubr.msk.bf16.mxu0 %vm1896_vm1, %v1895_v8 }
 0x38b   : > { %1537 = vmatprep.subr.bf16.mxu0 %v1895_v8 }
 0x38d   : > { %1522 = vmatmul.mubr.msk.bf16.vlgmr.msra.gmra.mrb[4].mxu1 %vm604_vm2, %v2182_v30 }
 0x38e   : > { %1533 = vmatprep.mubr.msk.bf16.mxu1 %vm1896_vm1, %v1895_v8 }
 0x391   : > { %1528 = vmatmul.mubr.msk.bf16.vlgmr.msra.gmra.mrb[8].mxu0 %vm604_vm2, %v2185_v33 }
 0x392   : > { %1539 = vmatprep.mubr.msk.bf16.mxu0 %vm1896_vm1, %v1895_v8 }
 0x3ef   : > { %v645_v41 = vpop.f32.mrb[0].mxu1 }
 0x3f0   : > { %v1511_v42 = vpop.f32.mrb[1].mxu1  ;;  %v798_v43 = vsel %vm604_vm2, %v645_v41, -inf }
 0x3f1   : > { %799 = vmax.xlane.f32.xlu1 %v798_v43  ;;  %v648_v44 = vpop.f32.mrb[2].mxu1 }
 0x3f2   : > { %v1512_v45 = vpop.f32.mrb[3].mxu1 }
 0x45c   : > { %v694_v46 = vpop.f32.mrb[4].mxu0 }
 0x45d   : > { %v1517_v47 = vpop.f32.mrb[5].mxu0  ;;  %v801_v48 = vsel %vm604_vm2, %v694_v46, -inf }
 0x45e   : > { %802 = vmax.xlane.f32.xlu0 %v801_v48  ;;  %v697_v49 = vpop.f32.mrb[6].mxu0  ;;  %v1675_v47 = vld [vmem:[%s2343_s5] sm:$0xff]   ;;  %v1676_v48 = vld [vmem:[%s2343_s5 + $0x8] sm:$0xff]  }
 0x45f   : > { %v1518_v50 = vpop.f32.mrb[7].mxu0 }
 0x460   : > { %v743_v51 = vpop.f32.mrb[4].mxu1 }
 0x461   : > { %v1523_v52 = vpop.f32.mrb[5].mxu1  ;;  %v804_v53 = vsel %vm604_vm2, %v743_v51, -inf }
 0x462   : > { %805 = vmax.xlane.f32.xlu1 %v804_v53  ;;  %v746_v54 = vpop.f32.mrb[6].mxu1 }
 0x463   : > { %v1524_v55 = vpop.f32.mrb[7].mxu1 }
 0x464   : > { %v792_v56 = vpop.f32.mrb[8].mxu0 }
 0x465   : > { %v1529_v57 = vpop.f32.mrb[9].mxu0  ;;  %v807_v58 = vsel %vm604_vm2, %v792_v56, -inf }
 0x466   : > { %808 = vmax.xlane.f32.xlu0 %v807_v58  ;;  %v795_v59 = vpop.f32.mrb[10].mxu0 }
 0x467   : > { %v1530_v60 = vpop.f32.mrb[11].mxu0 }
 0x473   : > { %846 = vrot.lane.b32.xlu1 %v597_v26, %s1901_s23 }
 0x47e   : > { %v800_v61 = vpop.xlane.xlu1 %799 }
 0x47f   : > { %v810_v62 = vsub.f32 %v645_v41, %v800_v61 }
 0x481   : > { %v814_v63 = vmul.f32 1.442695, %v810_v62 }
 0x483   : > { %1685 = vpow2.f32 %v814_v63 }
 0x48d   : > { %v1686_v1 = vpop.eup %1685 }
 0x48e   : > { %v822_v2 = vsel %vm604_vm2, %v1686_v1, 0.0 }
 0x497   : > { %823 = vadd.xlane.f32.xlu1 %v822_v2 }
 0x4eb   : > { %v803_v3 = vpop.xlane.xlu0 %802 }
 0x4ec   : > { %v811_v4 = vsub.f32 %v694_v46, %v803_v3 }
 0x4ee   : > { %v816_v5 = vmul.f32 1.442695, %v811_v4 }
 0x4ef   : > { %v806_v6 = vpop.xlane.xlu1 %805 }
 0x4f0   : > { %1687 = vpow2.f32 %v816_v5  ;;  %v812_v7 = vsub.f32 %v743_v51, %v806_v6  ;;  %v1449_v5 = vld [vmem:[#allocation5] ss:$0 sm:$0xff] }
 0x4f2   : > { %v818_v9 = vmul.f32 1.442695, %v812_v7 }
 0x4f3   : > { %v847_v10 = vpop.permute.xlu1 %846  ;;  %v809_v11 = vpop.xlane.xlu0 %808 }
 0x4f4   : > { %1689 = vpow2.f32 %v818_v9  ;;  %v853_v12 = vsel %vm851_vm3, %v847_v10, 0  ;;  %v813_v13 = vsub.f32 %v792_v56, %v809_v11 }
 0x4f5   : > { %1532 = vmatpush3.bf16.msra.mxu1 %v853_v12 }
 0x4f6   : > { %v820_v14 = vmul.f32 1.442695, %v813_v13  ;;  %1543 = vmatprep.subr.bf16.mxu1 %v1895_v8 }
 0x4f8   : > { %1691 = vpow2.f32 %v820_v14 }
 0x4fa   : > { %v1688_v15 = vpop.eup %1687 }
 0x4fb   : > { %v825_v16 = vsel %vm604_vm2, %v1688_v15, 0.0 }
 0x4fc   : > { %826 = vadd.xlane.f32.xlu0 %v825_v16 }
 0x4fe   : > { %v1690_v17 = vpop.eup %1689 }
 0x4ff   : > { %v828_v18 = vsel %vm604_vm2, %v1690_v17, 0.0 }
 0x500   : > { %829 = vadd.xlane.f32.xlu1 %v828_v18 }
 0x502   : > { %v1692_v19 = vpop.eup %1691 }
 0x503   : > { %v831_v20 = vsel %vm604_vm2, %v1692_v19, 0.0 }
 0x504   : > { %832 = vadd.xlane.f32.xlu0 %v831_v20  ;;  %v1679_v20 = vld [vmem:[%s2349_s11] sm:$0xff]  }
 0x511   : > { %943 = vrot.lane.b32.xlu1 %v2182_v30, %s1901_s23 }
 0x515   : > { %991 = vrot.lane.b32.xlu1 %v2185_v33, %s1901_s23 }
 0x51a   : > { %895 = vrot.lane.b32.xlu0 %v2179_v28, %s1901_s23 }
 0x524   : > { %v824_v21 = vpop.xlane.xlu1 %823 }
 0x525   : > { %1693 = vrcp.f32 %v824_v21  ;;  %v1680_v21 = vld [vmem:[%s2349_s11 + $0x8] sm:$0xff]  }
 0x52f   : > { %v1694_v22 = vpop.eup %1693 }
 0x530   : > { %v838_v23 = vmul.f32 %v1694_v22, %v1686_v1 }
 0x532   : > { %v842_v24 = vpack.c.bf16 %v838_v23, %v838_v23 }
 0x534   : > { %1534 = vmatmul.mubr.msk.bf16.vlgmr.msra.gmra.mrb[8].mxu1 %vm604_vm2, %v842_v24 }
 0x535   : > { %1545 = vmatprep.mubr.msk.bf16.mxu1 %vm1896_vm1, %v1895_v8 }
 0x589   : > { %v827_v25 = vpop.xlane.xlu0 %826 }
 0x58a   : > { %1695 = vrcp.f32 %v827_v25 }
 0x58d   : > { %v830_v26 = vpop.xlane.xlu1 %829 }
 0x58e   : > { %1697 = vrcp.f32 %v830_v26  ;;  %v1453_v26 = vld [vmem:[#allocation7] ss:$0 sm:$0xff] }
 0x591   : > { %v944_v27 = vpop.permute.xlu1 %943  ;;  %v833_v29 = vpop.xlane.xlu0 %832 }
 0x592   : > { %v949_v30 = vsel %vm851_vm3, %v944_v27, 0  ;;  %1699 = vrcp.f32 %v833_v29  ;;  %v1454_v29 = vld [vmem:[#allocation8] ss:$0 sm:$0xff] }
 0x593   : > { %1544 = vmatpush3.bf16.msra.mxu1 %v949_v30 }
 0x594   : > { %v1696_v28 = vpop.eup %1695  ;;  %1555 = vmatprep.subr.bf16.mxu1 %v1895_v8 }
 0x595   : > { %v839_v31 = vmul.f32 %v1696_v28, %v1688_v15  ;;  %v896_v32 = vpop.permute.xlu0 %895  ;;  %v992_v34 = vpop.permute.xlu1 %991 }
 0x596   : > { %v901_v33 = vsel %vm851_vm3, %v896_v32, 0  ;;  %v997_v38 = vsel %vm851_vm3, %v992_v34, 0  ;;  %v1681_v32 = vld [vmem:[%s2349_s11 + $0x10] sm:$0xff]   ;;  %v1455_v34 = vld [vmem:[%s2348_s10] ss:$0 sm:$0xff] }
 0x597   : > { %1538 = vmatpush3.bf16.msra.mxu0 %v901_v33  ;;  %v843_v35 = vpack.c.bf16 %v839_v31, %v839_v31  ;;  %v1682_v33 = vld [vmem:[%s2349_s11 + $0x18] sm:$0xff]  }
 0x598   : > { %v1698_v36 = vpop.eup %1697  ;;  %1549 = vmatprep.subr.bf16.mxu0 %v1895_v8 }
 0x599   : > { %v840_v37 = vmul.f32 %v1698_v36, %v1690_v17 }
 0x59a   : > { %1540 = vmatmul.mubr.msk.bf16.vlgmr.msra.gmra.mrb[12].mxu0 %vm604_vm2, %v843_v35 }
 0x59b   : > { %1550 = vmatpush3.bf16.msra.mxu0 %v997_v38  ;;  %v844_v39 = vpack.c.bf16 %v840_v37, %v840_v37  ;;  %1551 = vmatprep.mubr.msk.bf16.mxu0 %vm1896_vm1, %v1895_v8 }
 0x59c   : > { %v1700_v40 = vpop.eup %1699  ;;  %1563 = vmatprep.subr.bf16.mxu0 %v1895_v8 }
 0x59d   : > { %v841_v41 = vmul.f32 %v1700_v40, %v1692_v19  ;;  %1546 = vmatmul.mubr.msk.bf16.vlgmr.msra.gmra.mrb[12].mxu1 %vm604_vm2, %v844_v39  ;;  %v1677_v19 = vld [vmem:[%s2347_s9] sm:$0xff]  }
 0x59e   : > { %1559 = vmatprep.mubr.msk.bf16.mxu1 %vm1896_vm1, %v1895_v8  ;;  %1556 = vmatpush3.bf16.msra.mxu1 %v1675_v47 }
 0x59f   : > { %v845_v42 = vpack.c.bf16 %v841_v41, %v841_v41  ;;  %1557 = vmatprep.subr.bf16.mxu1 %v1895_v8 }
 0x5a2   : > { %1552 = vmatmul.mubr.msk.bf16.vlgmr.msra.gmra.mrb[16].mxu0 %vm604_vm2, %v845_v42  ;;  %1558 = vmatpush3.bf16.msra.mxu1 %v1676_v48 }
 0x5a3   : > { %1567 = vmatprep.mubr.msk.bf16.mxu0 %vm1896_vm1, %v1895_v8  ;;  %1571 = vmatprep.subr.bf16.mxu1 %v1895_v8 }
 0x5a4   : > { %1564 = vmatpush3.bf16.msra.mxu0 %v1677_v19 }
 0x5a5   : > { %1565 = vmatprep.subr.bf16.mxu0 %v1895_v8 }
 0x607   : > { %v889_v43 = vpop.f32.mrb[8].mxu1 }
 0x608   : > { %v1535_v44 = vpop.f32.mrb[9].mxu1 }
 0x609   : > { %v892_v45 = vpop.f32.mrb[10].mxu1 }
 0x60a   : > { %v1536_v46 = vpop.f32.mrb[11].mxu1 }
 0x66d   : > { %v937_v49 = vpop.f32.mrb[12].mxu0 }
 0x66e   : > { %1040 = vrot.lane.b32.xlu0 %v937_v49, %s1902_s14  ;;  %v1541_v50 = vpop.f32.mrb[13].mxu0  ;;  %s1905_s14 = smov [#allocation10]  }
 0x66f   : > { %v940_v51 = vpop.f32.mrb[14].mxu0 }
 0x670   : > { %v1542_v52 = vpop.f32.mrb[15].mxu0  ;;  %v985_v53 = vpop.f32.mrb[12].mxu1 }
 0x671   : > { %1044 = vrot.lane.b32.xlu1 %v985_v53, %s1903_s22  ;;  %v1547_v54 = vpop.f32.mrb[13].mxu1  ;;  %s1819_s22 = sshll.u32 %s1905_s14, 4  ;;  %s1820_s22 = int_to_ptr.vmem [resolvable:$false] %s1819_s22 }
 0x672   : > { %v988_v55 = vpop.f32.mrb[14].mxu1 }
 0x673   : > { %v1548_v56 = vpop.f32.mrb[15].mxu1 }
 0x675   : > { %v1033_v57 = vpop.f32.mrb[16].mxu0 }
 0x676   : > { %1048 = vrot.lane.b32.xlu0 %v1033_v57, %s1904_s24  ;;  %v1553_v58 = vpop.f32.mrb[17].mxu0  ;;  %s480_s24 = sand.u32 1, %s1881_s26  }
 0x677   : > { %v1036_v59 = vpop.f32.mrb[18].mxu0  ;;  %s1433_s13 = sshll.u32 %s480_s24, 3  ;;  %s1308_s29 = scalar_lea.sflag [#allocation4], %s480_s24 }
 0x678   : > { %v1554_v60 = vpop.f32.mrb[19].mxu0  ;;  %s482_s19 = scalar_lea.vmem [#allocation10], %s1433_s13  ;;  %s1821_s13 = scalar_lea.vmem %s1820_s22, 256 }
 0x679   : > { %s1321_s20 = sshll.u32 %s482_s19, 4  ;;  %s2297_s20 = int_to_ptr.vmem [resolvable:$true] %s1321_s20 }
 0x67a   : > { %s1815_s27 = scalar_lea.vmem %s2297_s20, 128  ;;  %p1822_p8 = scmp.lt.s32.totalorder %s2297_s20, %s1820_s22 }
 0x67b   : > { %p1816_p2 = scmp.ne.s32.totalorder %s2297_s20, %s1815_s27  ;;  %p1823_p11 = scmp.lt.s32.totalorder %s1821_s13, %s1815_s27 }
 0x67d   : > { %p1817_p4 = pnand %p1816_p2, %p2383_p3  ;;  %p1824_p13 = por %p1823_p11, %p1822_p8 }
 0x67f   : > { %p1818_p7 = pneg %p1817_p4 }
 0x681   : > { %p1825_p1 = pnand %p1824_p13, %p1818_p7 }
 0x6e0   : > { %v1041_v61 = vpop.permute.xlu0 %1040 }
 0x6e1   : > { %v1051_v63 = vsel %vm604_vm2, %v889_v43, %v1041_v61 }
 0x6e3   : > { %v1045_v62 = vpop.permute.xlu1 %1044 }
 0x6e4   : > { %v1053_v1 = vsel %vm1052_vm4, %v1051_v63, %v1045_v62 }
 0x6e8   : > { %v1049_v2 = vpop.permute.xlu0 %1048 }
 0x6e9   : > { %v1055_v3 = vsel %vm1054_vm5, %v1053_v1, %v1049_v2 }
 0x6ea   : > { %v1056_v4 = vpack.c.bf16 %v1055_v3, %v1055_v3 }
 0x6ec   : > { %1560 = vmatmul.mubr.msk.bf16.vlgmr.msra.gmra.mrb[16].mxu1 %vm491_vm0, %v1056_v4 }
 0x6ed   : > { %1579 = vmatprep.mubr.msk.bf16.mxu1 %vm1896_vm1, %v1895_v8  ;;  %1572 = vmatpush3.bf16.msra.mxu1 %v1679_v20 }
 0x6ee   : > { %1573 = vmatprep.subr.bf16.mxu1 %v1895_v8 }
 0x6f1   : > { %1574 = vmatpush3.bf16.msra.mxu1 %v1680_v21 }
 0x6f2   : > { %1575 = vmatprep.subr.bf16.mxu1 %v1895_v8 }
 0x6f5   : > { %1576 = vmatpush3.bf16.msra.mxu1 %v1681_v32 }
 0x6f6   : > { %1577 = vmatprep.subr.bf16.mxu1 %v1895_v8  ;;  %v1459_v8 = vld [vmem:[%s2350_s12] ss:$0 sm:$0xff] }
 0x6f9   : > { %1578 = vmatpush3.bf16.msra.mxu1 %v1682_v33 }
 0x7bf   : > { %v1117_v6 = vpop.f32.mrb[16].mxu1 }
 0x7c0   : > { %v1118_v7 = vadd.f32 %v1449_v5, %v1117_v6  ;;  %v1561_v9 = vpop.f32.mrb[17].mxu1 }
 0x7c1   : > { %v1120_v10 = vpop.f32.mrb[18].mxu1 }
 0x7c2   : > { %v1123_v11 = vadd.f32 %v1118_v7, %v2150_v0  ;;  %v1562_v12 = vpop.f32.mrb[19].mxu1  ;;  %v1678_v0 = vld [vmem:[%s2347_s9 + $0x8] sm:$0xff]  }
 0x7c3   : > { %1566 = vmatpush3.bf16.msra.mxu0 %v1678_v0 }
 0x7c4   : > { %v1126_v13 = vsel %vm491_vm0, %v1123_v11, 0.0 }
 0x7c5   : > { %1127 = vadd.xlane.f32.xlu1 %v1126_v13 }
 0x852   : > { %v1128_v14 = vpop.xlane.xlu1 %1127 }
 0x853   : > { %v1129_v15 = vmul.f32 0.03125, %v1128_v14 }
 0x855   : > { %v1130_v16 = vsub.f32 %v1123_v11, %v1129_v15 }
 0x857   : > { %v1131_v17 = vmul.f32 %v1130_v16, %v1130_v16 }
 0x859   : > { %v1132_v18 = vsel %vm491_vm0, %v1131_v17, 0.0 }
 0x85a   : > { %1133 = vadd.xlane.f32.xlu0 %v1132_v18 }
 0x8e7   : > { %v1134_v22 = vpop.xlane.xlu0 %1133 }
 0x8e8   : > { %v1135_v23 = vmul.f32 0.03125, %v1134_v22 }
 0x8ea   : > { %v1136_v24 = vadd.f32 1e-05, %v1135_v23 }
 0x8ec   : > { %1701 = vrsqrt.f32 %v1136_v24 }
 0x8f6   : > { %v1702_v25 = vpop.eup %1701 }
 0x8f7   : > { %v1138_v27 = vmul.f32 %v1702_v25, %v1130_v16 }
 0x8f9   : > { %v1145_v30 = vmul.f32 %v1453_v26, %v1138_v27 }
 0x8fb   : > { %v1152_v28 = vadd.f32 %v1454_v29, %v1145_v30 }
 0x8fd   : > { %v1153_v31 = vpack.c.bf16 %v1152_v28, %v1152_v28 }
 0x8ff   : > { %1568 = vmatmul.mubr.msk.bf16.vlgmr.msra.gmra.mrb[20].mxu0 %vm491_vm0, %v1153_v31 }
 0x9d2   : > { %v1214_v35 = vpop.f32.mrb[20].mxu0 }
 0x9d3   : > { %v1215_v36 = vadd.f32 %v1455_v34, %v1214_v35  ;;  %v1569_v37 = vpop.f32.mrb[21].mxu0 }
 0x9d4   : > { %v1217_v38 = vpop.f32.mrb[22].mxu0 }
 0x9d5   : > { %v1220_v39 = vmax.f32 %v1215_v36, 0.0  ;;  %v1570_v40 = vpop.f32.mrb[23].mxu0 }
 0x9d7   : > { %v1221_v41 = vpack.c.bf16 %v1220_v39, %v1220_v39 }
 0x9d9   : > { %1580 = vmatmul.mubr.msk.bf16.vlgmr.msra.gmra.mrb[20].mxu1 %vm1261_vm6, %v1221_v41 }
 0xaac   : > { %v1299_v42 = vpop.f32.mrb[20].mxu1 }
 0xaad   : > { %v1300_v43 = vadd.f32 %v1459_v8, %v1299_v42  ;;  %v1581_v44 = vpop.f32.mrb[21].mxu1 }
 0xaae   : > { %v1302_v45 = vpop.f32.mrb[22].mxu1 }
 0xaaf   : > { %v1305_v46 = vadd.f32 %v1300_v43, %v1123_v11  ;;  %v1582_v47 = vpop.f32.mrb[23].mxu1 }
 0xab1   : > { %1306 = vst.msk [vmem:[%s482_s19] sm:$0xff] %vm491_vm0, %v1305_v46 }
 0xab2   : > { %1828 = shalt.err (!%p1825_p1)
}
 0xab3   : > { %s1829_s24 = scalar_lea.hbm %s2295_s15, 128  ;;  %s1833_s17 = scalar_lea.hbm %s2382_s21, 256 }
 0xab4   : > { %p1830_p0 = scmp.ne.s32.totalorder %s2295_s15, %s1829_s24  ;;  %p1834_p9 = scmp.lt.u32.totalorder %s2295_s15, %s2382_s21 }
 0xab5   : > { %p1835_p12 = scmp.lt.u32.totalorder %s1833_s17, %s1829_s24  ;;  %p1837_p2 = scmp.lt.u32.totalorder %s1829_s24, %s2295_s15 }
 0xab6   : > { %p1831_p6 = pnand %p1830_p0, %p2383_p3 }
 0xab7   : > { %p1836_p10 = por %p1835_p12, %p1834_p9 }
 0xab8   : > { %p1832_p5 = pneg %p1831_p6 }
 0xab9   : > { %p1838_p4 = por %p1837_p2, %p1836_p10 }
 0xabb   : > { %p1839_p7 = pnand %p1838_p4, %p1832_p5 }
 0xabd   : > { %1842 = shalt.err (!%p1839_p7)
}
 0xabe   : > { %1599 = dma.vmem_to_hbm [thread:$0]  (%p2383_p3), %s2297_s20, 128, %s2295_s15, %s1308_s29  }
 0xabf PF: > { %s2384_s23 = sld [smem:[#allocation17_spill]]  ;;  %s2385_s25 = sld [smem:[#allocation15_spill]] }
 0xac0   : > { %s2386_s27 = sld [smem:[#allocation20_spill]] }
 0xac5   : > { %p1626_p8 = scmp.ge.s32.totalorder %s2384_s23, 2  ;;  %s1333_s14 = sand.u32 1, %s2385_s25  }
 0xac6   : > { %p2387_p11 = scmp.ne.s32.totalorder %s2386_s27, 0  ;;  %s1334_s22 = scalar_lea.sflag [#allocation4], %s1333_s14 }
 0xac8   : > { %p1615_p13 = pnand %p1626_p8, %p2387_p11 }
 0xaca   : > { %1872 = dma.done.wait (!%p1615_p13), %s1334_s22, 128  }
 0xacb   : > { %1874 = vsyncadd (!%p1615_p13), %s1334_s22, 4294967168  ;;  %s2388_s28 = sld [smem:[#allocation18_spill]]  ;;  %s2389_s13 = sld [smem:[#allocation16_spill]] }
 0xacc   : > { %s2390_s27 = sld [smem:[#allocation19_spill]]  ;;  %s2391_s25 = smov %s1881_s26 }
 0xad1   : > { %p26_p1 = scmp.ge.s32.totalorder %s2388_s28, 4   ;;  %s2392_s26 = smov %s2389_s13 }
 0xad3   :  { %28 = sbr.rel (!%p26_p1) target bundleno = 8 (0x8), region = 124 }
 0xada   :  { %1339 = vsyncpa [#allocation3], 1 }
 0xadb   :  { %1341 = vsyncpa [#allocation3 + $0x1], 1 }
 0xadc   :  { %1342 = vsyncpa [#allocation6], 1 }
 0xadd   :  { %1343 = vsyncpa [#allocation9], 1 }
 0xade   :  { %1344 = vsyncpa [#allocation4], 1 }
 0xadf   :  { %1346 = vsyncpa [#allocation4 + $0x1], 1 }

</bundles_post_ra>
